<compile_context>
chip_gen: v5e
topology: v5e:2x2
jax: 0.10.0
libtpu: 0.0.40
codegen_flags: <defaults>
</compile_context>

<pallas_src>
import jax
import jax.numpy as jnp
from jax.experimental import pallas as pl
from jax.experimental.pallas import tpu as pltpu


def _round_up(x, m):
    return (x + m - 1) // m * m


def _pick_tb(B):
    """Largest batch tile dividing B; prefer an even grid (v7x: 2 TCs get work) when it
    costs at most a 2x smaller tile. Single-TC chips (v5e/v6e) favour the biggest tile."""
    cands = (2048, 1024, 512, 256, 128, 64, 32, 16, 8)
    largest = next((c for c in cands if B % c == 0), None)
    even = next((c for c in cands if B % c == 0 and (B // c) % 2 == 0), None)
    if even is not None and largest is not None and largest // even <= 2:
        return even
    if largest is not None:
        return largest
    # TODO(synk): awkward batch sizes (not a multiple of 8) fall back to a full-array
    # block -> masked partial stores; pad B upstream for best performance.
    return B


def _pick_tk(Rp):
    for c in (512, 256, 128):
        if Rp % c == 0:
            return c
    return Rp


# ---------------------------------------------------------------------------
# Kernel: K-tiled (Linear+foldedBN)->ReLU, then full second layer + residual add.
# Grid = (batch tiles, K tiles over padded rating dim). All matmul operands bf16,
# accumulation / biases / output f32. All last dims are multiples of 128.
# ---------------------------------------------------------------------------
def cde_kernel(ue_ref, x_ref, w1_ref, b1_ref, w2_ref, b2_ref, out_ref, acc_ref):
    k = pl.program_id(1)

    @pl.when(k == 0)
    def _():
        acc_ref[...] = jnp.zeros_like(acc_ref)

    # layer 1 partial matmul over this K tile (bf16 x bf16 -> f32 accumulate)
    acc_ref[...] += jnp.dot(x_ref[...], w1_ref[...],
                            preferred_element_type=jnp.float32)

    @pl.when(k == pl.num_programs(1) - 1)
    def _():
        # finalize layer 1: folded-BN bias + ReLU
        h = jnp.maximum(acc_ref[...] + b1_ref[...], 0.0)            # [tb, Hp] f32
        # layer 2: folded Linear+BN + ReLU
        y = jnp.dot(h.astype(w2_ref.dtype), w2_ref[...],
                    preferred_element_type=jnp.float32) + b2_ref[...]
        y = jnp.maximum(y, 0.0)                                     # [tb, Dp] f32
        # residual add with the gathered user embedding
        out_ref[...] = ue_ref[...].astype(jnp.float32) + y


# ---------------------------------------------------------------------------
# One-time parameter preparation (model-load time): BN fold, padding, bf16 cast.
# ---------------------------------------------------------------------------
def prepare_params(params, eps=1e-5):
    U, D = params["emb"].shape
    R, H = params["w1"].shape
    Rp, Hp, Dp = _round_up(R, 128), _round_up(H, 128), _round_up(D, 128)

    # fold BatchNorm1d (running stats) + Linear bias
    scale1 = params["bn1_gamma"] / jnp.sqrt(params["bn1_var"] + eps)
    shift1 = params["bn1_beta"] - params["bn1_mean"] * scale1
    w1f = params["w1"] * scale1[None, :]                            # [R, H]
    b1f = params["b1"] * scale1 + shift1                            # [H]

    scale2 = params["bn2_gamma"] / jnp.sqrt(params["bn2_var"] + eps)
    shift2 = params["bn2_beta"] - params["bn2_mean"] * scale2
    w2f = params["w2"] * scale2[None, :]                            # [H, D]
    b2f = params["b2"] * scale2 + shift2                            # [D]

    # zero-pad to lane-dense shapes (pad bias cols = 0 -> ReLU(0)=0; pad w2 rows = 0)
    w1_p = jnp.pad(w1f, ((0, Rp - R), (0, Hp - H))).astype(jnp.bfloat16)
    b1_p = jnp.pad(b1f, (0, Hp - H)).reshape(1, Hp).astype(jnp.float32)
    w2_p = jnp.pad(w2f, ((0, Hp - H), (0, Dp - D))).astype(jnp.bfloat16)
    b2_p = jnp.pad(b2f, (0, Dp - D)).reshape(1, Dp).astype(jnp.float32)

    # pre-pad the embedding table so the XLA gather already yields [B, Dp] bf16
    emb_p = params["emb"].astype(jnp.bfloat16)
    if Dp != D:
        emb_p = jnp.pad(emb_p, ((0, 0), (0, Dp - D)))

    return {
        "emb_p": emb_p, "w1_p": w1_p, "b1_p": b1_p, "w2_p": w2_p, "b2_p": b2_p,
        "R": R, "H": H, "D": D, "Rp": Rp, "Hp": Hp, "Dp": Dp,
    }


# ---------------------------------------------------------------------------
# Per-call forward (eval mode).
# ---------------------------------------------------------------------------
def collaborative_denoising_encoder(input_data, prepped, *, tb=None):
    """input_data: [B, 1 + R] float array. Returns [B, latent_space_dim] float32."""
    B = input_data.shape[0]
    R, D = prepped["R"], prepped["D"]
    Rp, Hp, Dp = prepped["Rp"], prepped["Hp"], prepped["Dp"]

    # user ids travel as float in input_data (exact only for ids < 2^24)
    uid = input_data[:, 0].astype(jnp.int32)                        # [B]
    ratings = input_data[:, 1:].astype(jnp.bfloat16)                # [B, R]
    assert ratings.shape[1] == R

    # Embedding lookup as an XLA gather; table (already padded, bf16) stays in HBM.
    users_embed = jnp.take(prepped["emb_p"], uid, axis=0)           # [B, Dp] bf16

    # noise_layer (Dropout) is identity in eval mode.
    x = ratings if Rp == R else jnp.pad(ratings, ((0, 0), (0, Rp - R)))

    if tb is None:
        tb = _pick_tb(B)
    assert B % tb == 0, "batch must be a multiple of the batch tile"
    tk = _pick_tk(Rp)
    grid = (B // tb, Rp // tk)

    out_p = pl.pallas_call(
        cde_kernel,
        out_shape=jax.ShapeDtypeStruct((B, Dp), jnp.float32),
        grid_spec=pltpu.PrefetchScalarGridSpec(
            num_scalar_prefetch=0,
            grid=grid,
            in_specs=[
                pl.BlockSpec((tb, Dp), lambda i, k: (i, 0)),   # gathered user embeddings
                pl.BlockSpec((tb, tk), lambda i, k: (i, k)),   # ratings K tile
                pl.BlockSpec((tk, Hp), lambda i, k: (k, 0)),   # folded w1 K tile
                pl.BlockSpec((1, Hp), lambda i, k: (0, 0)),    # folded b1
                pl.BlockSpec((Hp, Dp), lambda i, k: (0, 0)),   # folded w2
                pl.BlockSpec((1, Dp), lambda i, k: (0, 0)),    # folded b2
            ],
            out_specs=pl.BlockSpec((tb, Dp), lambda i, k: (i, 0)),
            scratch_shapes=[pltpu.VMEM((tb, Hp), jnp.float32)],
        ),
        compiler_params=pltpu.CompilerParams(
            dimension_semantics=("parallel", "arbitrary"),
            vmem_limit_bytes=32 * 1024 * 1024),
    )(users_embed, x, prepped["w1_p"], prepped["b1_p"], prepped["w2_p"], prepped["b2_p"])

    return out_p if Dp == D else out_p[:, :D]


# ---------------------------------------------------------------------------
# Parameter construction (torch-equivalent layout, unfolded BN stats) + reference.
# ---------------------------------------------------------------------------
def make_params(key, n_users, n_item_ratings, hidden, latent_space_dim):
    D, R, H, U = latent_space_dim, n_item_ratings, hidden, n_users
    ks = jax.random.split(key, 13)
    emb = jax.random.normal(ks[0], (U, D), jnp.float32) * 0.1
    # Linear weights stored [in, out] (torch keeps [out, in]; transpose is parameter glue).
    w1 = jax.random.normal(ks[1], (R, H), jnp.float32) * 0.1
    b1 = jax.random.normal(ks[2], (H,), jnp.float32) * 0.01
    w2 = jax.random.normal(ks[3], (H, D), jnp.float32) * 0.1
    b2 = jax.random.normal(ks[4], (D,), jnp.float32) * 0.01
    # BatchNorm1d parameters / running stats (non-trivial so folding is actually exercised).
    bn1_gamma = 1.0 + 0.1 * jax.random.normal(ks[5], (H,), jnp.float32)
    bn1_beta = 0.1 * jax.random.normal(ks[6], (H,), jnp.float32)
    bn1_mean = 0.1 * jax.random.normal(ks[7], (H,), jnp.float32)
    bn1_var = jnp.abs(1.0 + 0.1 * jax.random.normal(ks[8], (H,), jnp.float32))
    bn2_gamma = 1.0 + 0.1 * jax.random.normal(ks[9], (D,), jnp.float32)
    bn2_beta = 0.1 * jax.random.normal(ks[10], (D,), jnp.float32)
    bn2_mean = 0.1 * jax.random.normal(ks[11], (D,), jnp.float32)
    bn2_var = jnp.abs(1.0 + 0.1 * jax.random.normal(ks[12], (D,), jnp.float32))
    return {
        "emb": emb,
        "w1": w1, "b1": b1,
        "bn1_gamma": bn1_gamma, "bn1_beta": bn1_beta, "bn1_mean": bn1_mean, "bn1_var": bn1_var,
        "w2": w2, "b2": b2,
        "bn2_gamma": bn2_gamma, "bn2_beta": bn2_beta, "bn2_mean": bn2_mean, "bn2_var": bn2_var,
    }


def reference_forward(input_data, params, eps=1e-5):
    """Pure-JAX f32 reference mirroring the torch forward (eval mode, unfolded BN)."""
    uid = input_data[:, 0].astype(jnp.int32)
    x = input_data[:, 1:].astype(jnp.float32)
    ue = params["emb"][uid]
    h = x @ params["w1"] + params["b1"]
    h = (h - params["bn1_mean"]) / jnp.sqrt(params["bn1_var"] + eps) \
        * params["bn1_gamma"] + params["bn1_beta"]
    h = jnp.maximum(h, 0.0)
    y = h @ params["w2"] + params["b2"]
    y = (y - params["bn2_mean"]) / jnp.sqrt(params["bn2_var"] + eps) \
        * params["bn2_gamma"] + params["bn2_beta"]
    y = jnp.maximum(y, 0.0)
    return ue + y


if __name__ == "__main__":
    # Small shapes consistent with the module's forward contract.
    B = 256               # batch (-> tb=128, grid=(2,1): even grid keeps both v7x TCs busy)
    n_users = 64
    n_item_ratings = 48   # R (zero-padded to 128 in prepare_params / wrapper)
    hidden = 64           # ratings_hidden_units=[64]  (zero-padded to 128)
    latent_space_dim = 128

    key = jax.random.PRNGKey(0)
    k_p, k_u, k_r = jax.random.split(key, 3)

    params = make_params(k_p, n_users, n_item_ratings, hidden, latent_space_dim)
    prepped = prepare_params(params)      # one-time: BN fold, pad, bf16 cast

    user_ids = jax.random.randint(k_u, (B, 1), 0, n_users).astype(jnp.float32)
    ratings = jax.random.normal(k_r, (B, n_item_ratings), jnp.float32)
    input_data = jnp.concatenate([user_ids, ratings], axis=1)      # [B, 1 + R]

    out = collaborative_denoising_encoder(input_data, prepped)
    out = jax.block_until_ready(out)

    ref = reference_forward(input_data, params)
    assert out.shape == (B, latent_space_dim)
    # bf16 matmul operands -> loosened tolerance vs. the f32 reference
    assert jnp.allclose(out, ref, atol=3e-2, rtol=3e-2), \
        f"max abs err = {jnp.max(jnp.abs(out - ref))}"
    print("KERNEL_OK")
</pallas_src>

<mosaic_0001>
module attributes {stable_mosaic.version = 11 : i64} {
  func.func @cde_kernel(%arg0: i32, %arg1: i32, %arg2: memref<128x128xbf16, #tpu.memory_space<vmem>>, %arg3: memref<128x128xbf16, #tpu.memory_space<vmem>>, %arg4: memref<128x128xbf16, #tpu.memory_space<vmem>>, %arg5: memref<1x128xf32, #tpu.memory_space<vmem>>, %arg6: memref<128x128xbf16, #tpu.memory_space<vmem>>, %arg7: memref<1x128xf32, #tpu.memory_space<vmem>>, %arg8: memref<128x128xf32, #tpu.memory_space<vmem>>, %arg9: memref<128x128xf32, #tpu.memory_space<vmem>>) attributes {dimension_semantics = [#tpu.dimension_semantics<parallel>, #tpu.dimension_semantics<arbitrary>], iteration_bounds = array<i64: 2, 1>, scalar_prefetch = 0 : i64, scratch_operands = 1 : i64, tpu.core_type = #tpu.core_type<tc>, window_params = [{transform_indices = @transform_0, window_bounds = array<i64: 128, 128>}, {transform_indices = @transform_1, window_bounds = array<i64: 128, 128>}, {transform_indices = @transform_2, window_bounds = array<i64: 128, 128>}, {pipeline_mode = #tpu.pipeline_mode<synchronous>, transform_indices = @transform_3, window_bounds = array<i64: 1, 128>}, {pipeline_mode = #tpu.pipeline_mode<synchronous>, transform_indices = @transform_4, window_bounds = array<i64: 128, 128>}, {pipeline_mode = #tpu.pipeline_mode<synchronous>, transform_indices = @transform_5, window_bounds = array<i64: 1, 128>}, {transform_indices = @transform_6, window_bounds = array<i64: 128, 128>}]} {
    %c0_i32 = arith.constant 0 : i32
    %0 = arith.cmpi eq, %arg1, %c0_i32 : i32
    %1 = arith.extui %0 : i1 to i32
    %c0_i32_0 = arith.constant 0 : i32
    %2 = arith.cmpi ne, %1, %c0_i32_0 : i32
    scf.if %2 {
      %cst_10 = arith.constant 0.000000e+00 : f32
      %12 = vector.broadcast %cst_10 : f32 to vector<128x128xf32>
      %c0_11 = arith.constant 0 : index
      %c0_12 = arith.constant 0 : index
      %13 = vector.load %arg9[%c0_11, %c0_12] : memref<128x128xf32, #tpu.memory_space<vmem>>, vector<128x128xf32>
      tpu.vector_store %arg9[%c0_11, %c0_12], %12 {strides = array<i32>} : memref<128x128xf32, #tpu.memory_space<vmem>>, vector<128x128xf32>,
    } else {
    }
    %c0 = arith.constant 0 : index
    %c0_1 = arith.constant 0 : index
    %3 = vector.load %arg9[%c0, %c0_1] : memref<128x128xf32, #tpu.memory_space<vmem>>, vector<128x128xf32>
    %c0_2 = arith.constant 0 : index
    %c0_3 = arith.constant 0 : index
    %4 = vector.load %arg3[%c0_2, %c0_3] : memref<128x128xbf16, #tpu.memory_space<vmem>>, vector<128x128xbf16>
    %c0_4 = arith.constant 0 : index
    %c0_5 = arith.constant 0 : index
    %5 = vector.load %arg4[%c0_4, %c0_5] : memref<128x128xbf16, #tpu.memory_space<vmem>>, vector<128x128xbf16>
    %cst = arith.constant dense<0.000000e+00> : vector<128x128xf32>
    %6 = tpu.matmul %4, %5, %cst {dimension_numbers = #tpu.dot_dimension_numbers<[1], [0], [0], [1], [0, 0, 1, 1], [], []>} : vector<128x128xbf16>, vector<128x128xbf16>, vector<128x128xf32> -> vector<128x128xf32>
    %7 = arith.addf %3, %6 : vector<128x128xf32>
    %c0_6 = arith.constant 0 : index
    %c0_7 = arith.constant 0 : index
    %8 = vector.load %arg9[%c0_6, %c0_7] : memref<128x128xf32, #tpu.memory_space<vmem>>, vector<128x128xf32>
    tpu.vector_store %arg9[%c0_6, %c0_7], %7 {strides = array<i32>} : memref<128x128xf32, #tpu.memory_space<vmem>>, vector<128x128xf32>,
    %c0_i32_8 = arith.constant 0 : i32
    %9 = arith.cmpi eq, %arg1, %c0_i32_8 : i32
    %10 = arith.extui %9 : i1 to i32
    %c0_i32_9 = arith.constant 0 : i32
    %11 = arith.cmpi ne, %10, %c0_i32_9 : i32
    scf.if %11 {
      %c0_10 = arith.constant 0 : index
      %c0_11 = arith.constant 0 : index
      %12 = vector.load %arg9[%c0_10, %c0_11] : memref<128x128xf32, #tpu.memory_space<vmem>>, vector<128x128xf32>
      %c0_12 = arith.constant 0 : index
      %c0_13 = arith.constant 0 : index
      %13 = vector.load %arg5[%c0_12, %c0_13] : memref<1x128xf32, #tpu.memory_space<vmem>>, vector<1x128xf32>
      %14 = vector.broadcast %13 : vector<1x128xf32> to vector<128x128xf32>
      %15 = arith.addf %12, %14 : vector<128x128xf32>
      %cst_14 = arith.constant 0.000000e+00 : f32
      %16 = vector.broadcast %cst_14 : f32 to vector<128x128xf32>
      %17 = arith.maximumf %15, %16 : vector<128x128xf32>
      %18 = arith.truncf %17 : vector<128x128xf32> to vector<128x128xbf16>
      %c0_15 = arith.constant 0 : index
      %c0_16 = arith.constant 0 : index
      %19 = vector.load %arg6[%c0_15, %c0_16] : memref<128x128xbf16, #tpu.memory_space<vmem>>, vector<128x128xbf16>
      %cst_17 = arith.constant dense<0.000000e+00> : vector<128x128xf32>
      %20 = tpu.matmul %18, %19, %cst_17 {dimension_numbers = #tpu.dot_dimension_numbers<[1], [0], [0], [1], [0, 0, 1, 1], [], []>} : vector<128x128xbf16>, vector<128x128xbf16>, vector<128x128xf32> -> vector<128x128xf32>
      %c0_18 = arith.constant 0 : index
      %c0_19 = arith.constant 0 : index
      %21 = vector.load %arg7[%c0_18, %c0_19] : memref<1x128xf32, #tpu.memory_space<vmem>>, vector<1x128xf32>
      %22 = vector.broadcast %21 : vector<1x128xf32> to vector<128x128xf32>
      %23 = arith.addf %20, %22 : vector<128x128xf32>
      %cst_20 = arith.constant 0.000000e+00 : f32
      %24 = vector.broadcast %cst_20 : f32 to vector<128x128xf32>
      %25 = arith.maximumf %23, %24 : vector<128x128xf32>
      %c0_21 = arith.constant 0 : index
      %c0_22 = arith.constant 0 : index
      %26 = vector.load %arg2[%c0_21, %c0_22] : memref<128x128xbf16, #tpu.memory_space<vmem>>, vector<128x128xbf16>
      %27 = arith.extf %26 : vector<128x128xbf16> to vector<128x128xf32>
      %28 = arith.addf %27, %25 : vector<128x128xf32>
      %c0_23 = arith.constant 0 : index
      %c0_24 = arith.constant 0 : index
      %29 = vector.load %arg8[%c0_23, %c0_24] : memref<128x128xf32, #tpu.memory_space<vmem>>, vector<128x128xf32>
      tpu.vector_store %arg8[%c0_23, %c0_24], %28 {strides = array<i32>} : memref<128x128xf32, #tpu.memory_space<vmem>>, vector<128x128xf32>,
    } else {
    }
    return
  }
  func.func @transform_0(%arg0: i32, %arg1: i32) -> (i32, i32) {
    %c0_i32 = arith.constant 0 : i32
    %c0_i32_0 = arith.constant 0 : i32
    return %arg0, %c0_i32 : i32, i32
  }
  func.func @transform_1(%arg0: i32, %arg1: i32) -> (i32, i32) {
    %c0_i32 = arith.constant 0 : i32
    return %arg0, %arg1 : i32, i32
  }
  func.func @transform_2(%arg0: i32, %arg1: i32) -> (i32, i32) {
    %c0_i32 = arith.constant 0 : i32
    %c0_i32_0 = arith.constant 0 : i32
    return %arg1, %c0_i32 : i32, i32
  }
  func.func @transform_3(%arg0: i32, %arg1: i32) -> (i32, i32) {
    %c0_i32 = arith.constant 0 : i32
    %c0_i32_0 = arith.constant 0 : i32
    %c0_i32_1 = arith.constant 0 : i32
    return %c0_i32, %c0_i32_0 : i32, i32
  }
  func.func @transform_4(%arg0: i32, %arg1: i32) -> (i32, i32) {
    %c0_i32 = arith.constant 0 : i32
    %c0_i32_0 = arith.constant 0 : i32
    %c0_i32_1 = arith.constant 0 : i32
    return %c0_i32, %c0_i32_0 : i32, i32
  }
  func.func @transform_5(%arg0: i32, %arg1: i32) -> (i32, i32) {
    %c0_i32 = arith.constant 0 : i32
    %c0_i32_0 = arith.constant 0 : i32
    %c0_i32_1 = arith.constant 0 : i32
    return %c0_i32, %c0_i32_0 : i32, i32
  }
  func.func @transform_6(%arg0: i32, %arg1: i32) -> (i32, i32) {
    %c0_i32 = arith.constant 0 : i32
    %c0_i32_0 = arith.constant 0 : i32
    return %arg0, %c0_i32 : i32, i32
  }
}

</mosaic_0001>

<bundles_post_ra>
// kernel: tpu_custom_call.1
= control target key start
LH: loop header
LB: loop body
LE: loop exit
PB: predicated region body
PF: predicated region fallthrough
CT: control target
= control target key end

     0   :  { %s1813_s0 = inlined_call_operand.hbm [shape: bf16[256,128], index: 0, kind: input, shape index: {}]   ;;  %s1814_s1 = inlined_call_operand.hbm [shape: bf16[256,128], index: 1, kind: input, shape index: {}]   ;;  %s1815_s2 = inlined_call_operand.hbm [shape: bf16[128,128], index: 2, kind: input, shape index: {}]   ;;  %s1816_s3 = inlined_call_operand.vmem [shape: f32[1,128], index: 3, kind: input, shape index: {}]   ;;  %s1817_s4 = inlined_call_operand.hbm [shape: bf16[128,128], index: 4, kind: input, shape index: {}]   ;;  %s1818_s5 = inlined_call_operand.vmem [shape: f32[1,128], index: 5, kind: input, shape index: {}]   ;;  %s1819_s6 = inlined_call_operand.hbm [shape: f32[256,128], index: 6, kind: output, shape index: {}]  }
   0x1   :  { %1828 = sst [smem:[#allocation22_spill]] %s1815_s2 }
   0x2   :  { %1829 = sst [smem:[#allocation23_spill]] %s1817_s4 }
   0x3   :  { %11 = vsyncpa [#allocation4], 0 }
   0x4   :  { %13 = vsyncpa [#allocation4 + $0x1], 0 }
   0x5   :  { %14 = vsyncpa [#allocation7], 0 }
   0x6   :  { %16 = vsyncpa [#allocation7 + $0x1], 0 }
   0x7   :  { %17 = vsyncpa [#allocation10], 0 }
   0x8   :  { %18 = vsyncpa [#allocation5], 0 }
   0x9   :  { %20 = vsyncpa [#allocation5 + $0x1], 0  ;;  %s1574_s21 = smov 0   ;;  %s1576_s22 = smov 0  }
   0xa   :  { %s1578_s23 = smov 0   ;;  %s1580_s24 = smov 0  }
   0xb   :  { %s1582_s25 = smov 0   ;;  %s1584_s26 = smov 0  }
   0xc LB: > { %1830 = sst [smem:[#allocation17_spill]] %s1519_s23  ;;  %s1605_s27 = sadd.s32 4294967295, %s1531_s26   ;;  %s1531_s26 = sphi %s1584_s26, %s26_s26   ;;  %s1527_s25 = sphi %s1582_s25, %s1848_s25   ;;  %s1523_s24 = sphi %s1580_s24, %s1847_s24   ;;  %s1519_s23 = sphi %s1578_s23, %s1846_s23   ;;  %s1515_s22 = sphi %s1576_s22, %s1850_s22   ;;  %s1511_s21 = sphi %s1574_s21, %s1849_s21  }
   0xd   : > { %1831 = sst [smem:[#allocation18_spill]] %s1527_s25  ;;  %s1023_s28 = sadd.s32 4294967294, %s1531_s26  }
   0xe   : > { %p58_p0 = scmp.ne.s32.totalorder %s1515_s22, %s1511_s21  ;;  %p59_p1 = scmp.eq.s32.totalorder %s1605_s27, 0 }
   0xf   : > { %p199_p2 = scmp.eq.s32.totalorder %s1605_s27, 1  ;;  %p205_p3 = scmp.eq.s32.totalorder %s1023_s28, 1 }
  0x10   : > { %p1614_p4 = por %p59_p1, %p58_p0  ;;  %p1024_p5 = scmp.ge.s32.totalorder %s1531_s26, 1 }
  0x11   : > { %p1619_p6 = por %p205_p3, %p58_p0  ;;  %p212_p7 = scmp.lt.s32.totalorder %s1531_s26, 3 }
  0x12   : > { %s1835_s2 = sld [smem:[#allocation22_spill]]  ;;  %s1533_s11 = smov [#allocation8]  }
  0x13   : > { %s1833_s30 = scalar_select %p1619_p6, 1, 0 }
  0x14   : > { %p1627_p8 = pnand %p1024_p5, %p212_p7  ;;  %s228_s12 = sshll.u32 %s1533_s11, 4  ;;  %s229_s12 = int_to_ptr.vmem [resolvable:$true] %s228_s12 }
  0x15   : > { %1834 = sst [smem:[#allocation19_spill]] %s1833_s30  ;;  %p1027_p11 = scmp.ge.s32.totalorder %s1531_s26, 2 }
  0x16   : > { %p1237_p9 = pneg %p1627_p8  ;;  %s1837_s4 = sld [smem:[#allocation23_spill]] }
  0x17   : > { %s1820_s16 = smov 64   ;;  %s1822_s17 = smov 4  }
  0x18   : > { %s226_s9 = sshll.u32 %s1835_s2, 4  ;;  %p1238_p10 = pnand %p1237_p9, %p59_p1  ;;  %s227_s9 = int_to_ptr.hbm [resolvable:$true] %s226_s9 }
  0x19   : > { %s1536_s18 = smov [#allocation9]   ;;  %s38_s20 = sadd.s32 1, %s1527_s25 }
  0x1a   : > { %1240 = dma.hbm_to_vmem [thread:$0]  (!%p1238_p10), %s227_s9, 1024, %s229_s12, [#allocation7], %s1820_s16, %s1820_s16, %s1822_s17  }
  0x1b   : > { %s245_s19 = sshll.u32 %s1536_s18, 4  ;;  %s45_s28 = sadd.s32 1, %s1519_s23  ;;  %s246_s19 = int_to_ptr.vmem [resolvable:$true] %s245_s19 }
  0x1c   : > { %s243_s15 = sshll.u32 %s1837_s4, 4  ;;  %p40_p12 = scmp.ge.s32.totalorder %s38_s20, 2  ;;  %s244_s15 = int_to_ptr.hbm [resolvable:$true] %s243_s15 }
  0x1d   : > { %1243 = dma.hbm_to_vmem [thread:$0]  (!%p1238_p10), %s244_s15, 1024, %s246_s19, [#allocation10], %s1820_s16, %s1820_s16, %s1822_s17  }
  0x1e   : > { %p52_p13 = scmp.ne.s32.totalorder %s1519_s23, %s1515_s22  ;;  %p53_p0 = scmp.eq.s32.totalorder %s1531_s26, 0 }
  0x1f   : > { %p1257_p3 = scmp.lt.s32.totalorder %s1531_s26, 2  ;;  %s1852_s20 = smov (%p40_p12, %s38_s20), 0 }
  0x20   : > { %1838 = sst [smem:[#allocation20_spill]] %s1852_s20  ;;  %p1653_p5 = por %p53_p0, %p52_p13 }
  0x21   : > { %p1659_p7 = por %p199_p2, %p52_p13  ;;  %s42_s9 = ssub.s32 %s1527_s25, %s1852_s20 }
  0x22   : > { %s262_s11 = sand.u32 1, %s1519_s23   ;;  %p43_p9 = scmp.eq.s32.totalorder %s42_s9, 0 }
  0x23   : > { %s1028_s12 = sshll.u32 %s262_s11, 6  ;;  %s1141_s13 = sshll.u32 %s1527_s25, 6 }
  0x24   : > { %s1668_s14 = scalar_select %p43_p9, %s1519_s23, %s45_s28  }
  0x25   : > { %s271_s19 = scalar_lea.hbm %s1813_s0, %s1141_s13  ;;  %s266_s17 = scalar_lea.vmem [#allocation3], %s1028_s12 }
  0x26   : > { %1841 = sst [smem:[#allocation21_spill]] %s1668_s14  ;;  %s272_s16 = sshll.u32 %s271_s19, 4  ;;  %s273_s16 = int_to_ptr.hbm [resolvable:$true] %s272_s16 }
  0x27   : > { %s274_s2 = sshll.u32 %s266_s17, 4  ;;  %p1245_p2 = pnand %p1257_p3, %p1653_p5  ;;  %s275_s2 = int_to_ptr.vmem [resolvable:$true] %s274_s2 }
  0x28   : > { %s294_s9 = scalar_lea.hbm %s1814_s1, %s1141_s13  ;;  %s288_s25 = scalar_lea.vmem [#allocation6], %s1028_s12 }
  0x29   : > { %s297_s28 = sshll.u32 %s288_s25, 4  ;;  %s295_s14 = sshll.u32 %s294_s9, 4  ;;  %s296_s14 = int_to_ptr.hbm [resolvable:$true] %s295_s14  ;;  %s298_s28 = int_to_ptr.vmem [resolvable:$true] %s297_s28 }
  0x2a   : > { %s263_s23 = scalar_lea.sflag [#allocation4], %s262_s11  ;;  %s1842_s30 = smov 4  }
  0x2b   : > { %s1843_s15 = smov 64   ;;  %s284_s17 = sand.u32 1, %s1531_s26  }
  0x2c   : > { %1247 = dma.hbm_to_vmem [thread:$0]  (!%p1245_p2), %s273_s16, 1024, %s275_s2, %s263_s23, %s1843_s15, %s1843_s15, %s1842_s30  }
  0x2d   : > { %s285_s18 = scalar_lea.sflag [#allocation7], %s284_s17  ;;  %309 = sbr.rel (%p1627_p8) target bundleno = 434 (0x1b2), region = 44 }
  0x2e   : > { %1250 = dma.hbm_to_vmem [thread:$0]  (!%p1245_p2), %s296_s14, 1024, %s298_s28, %s285_s18, %s1843_s15, %s1843_s15, %s1842_s30  }
  0x2f   : > { %s1690_s4 = sand.u32 (!%p1627_p8), 1, %s1515_s22  }
  0x30   : > { %s1035_s25 = sshll.u32 (!%p1627_p8), %s1690_s4, 6  ;;  %s312_s20 = scalar_lea.sflag (!%p1627_p8), [#allocation4], %s1690_s4 }
  0x31   : > { %s1694_s2 = scalar_lea.vmem (!%p1627_p8), [#allocation3], %s1035_s25 }
  0x32   : > { %1490 = dma.done.wait (%p1614_p4), %s312_s20, 1024  }
  0x33   : > { %1492 = vsyncadd (%p1614_p4), %s312_s20, 4294966272  ;;  %s321_s23 = sand.u32 1, %s1605_s27   ;;  %s1701_s10 = scalar_lea.vmem [#allocation6], %s1035_s25 }
  0x34   : > { %s322_s30 = scalar_lea.sflag [#allocation7], %s321_s23 }
  0x35   : > { %1494 = dma.done.wait (%p1614_p4), %s322_s30, 1024  }
  0x36   : > { %1496 = vsyncadd (%p1614_p4), %s322_s30, 4294966272 }
  0x37   : > { %1498 = dma.done.wait (%p59_p1), [#allocation7], 1024  }
  0x38   : > { %1500 = vsyncadd (%p59_p1), [#allocation7], 4294966272 }
  0x39   : > { %1502 = dma.done.wait (%p59_p1), [#allocation10], 1024  }
  0x3a   : > { %1504 = vsyncadd (%p59_p1), [#allocation10], 4294966272  ;;  %v1158_v0 = vld [vmem:[#allocation8 + $0x38] sm:$0xff]  ;;  %v1157_v1 = vld [vmem:[#allocation8 + $0x30] sm:$0xff]  ;;  %s1039_s11 = sshll.u32 %s1690_s4, 7  ;;  %s1167_s13 = sshll.u32 %s1523_s24, 7 }
  0x3b   : > { %538 = vmatpush.bf16.msra.mxu0 %v1158_v0  ;;  %1207 = vmatpush.bf16.msra.mxu2 %v1158_v0  ;;  %v1156_v2 = vld [vmem:[#allocation8 + $0x28] sm:$0xff]  ;;  %v1155_v3 = vld [vmem:[#allocation8 + $0x20] sm:$0xff]  ;;  %v1154_v4 = vld [vmem:[#allocation8 + $0x18] sm:$0xff]  ;;  %s1734_s12 = scalar_lea.vmem [#allocation11], %s1039_s11  ;;  %s891_s9 = scalar_lea.hbm %s1819_s6, %s1167_s13 }
  0x3c   : > { %v1153_v5 = vld [vmem:[#allocation8 + $0x10] sm:$0xff]  ;;  %v1152_v6 = vld [vmem:[#allocation8 + $0x8] sm:$0xff]  ;;  %v1151_v7 = vld [vmem:[#allocation8] sm:$0xff]  ;;  %s892_s28 = sshll.u32 %s1734_s12, 4  ;;  %s894_s15 = sshll.u32 %s891_s9, 4  ;;  %s893_s28 = int_to_ptr.vmem [resolvable:$true] %s892_s28  ;;  %s895_s15 = int_to_ptr.hbm [resolvable:$true] %s894_s15 }
  0x3d   : > { %v1143_v8 = vld [vmem:[%s1701_s10] sm:$0xff]  ;;  %v1144_v10 = vld [vmem:[%s1701_s10 + $0x8] sm:$0xff]  ;;  %v1166_v12 = vld [vmem:[#allocation9 + $0x38] sm:$0xff]  ;;  %s880_s17 = scalar_lea.sflag [#allocation5], %s1690_s4  ;;  %s1451_s24 = sshra.s32 %s895_s15, 4  ;;  %s1452_s24 = int_to_ptr.hbm [resolvable:$true] %s1451_s24 }
  0x3e   : > { %v1147_v9 = vld [vmem:[%s1701_s10 + $0x20] sm:$0xff]  ;;  %v1148_v11 = vld [vmem:[%s1701_s10 + $0x28] sm:$0xff]  ;;  %750 = vmatpush.bf16.msra.mxu1 %v1166_v12  ;;  %v1165_v13 = vld [vmem:[#allocation9 + $0x30] sm:$0xff]  ;;  %1215 = vmatpush.bf16.msra.mxu3 %v1166_v12  ;;  %s1453_s18 = scalar_lea.hbm %s1452_s24, 128  ;;  %p1458_p10 = scmp.lt.s32.totalorder %s1452_s24, %s1819_s6 }
  0x3f   : > { %539 = vmatpush.bf16.msra.mxu0 %v1157_v1  ;;  %1208 = vmatpush.bf16.msra.mxu2 %v1157_v1  ;;  %v1164_v14 = vld [vmem:[#allocation9 + $0x28] sm:$0xff]  ;;  %v1163_v15 = vld [vmem:[#allocation9 + $0x20] sm:$0xff]  ;;  %v1145_v16 = vld [vmem:[%s1701_s10 + $0x10] sm:$0xff]  ;;  %p1454_p1 = scmp.ne.s32.totalorder %s1452_s24, %s1453_s18 }
  0x40   : > { %v1149_v17 = vld [vmem:[%s1701_s10 + $0x30] sm:$0xff]  ;;  %v1146_v18 = vld [vmem:[%s1701_s10 + $0x18] sm:$0xff]  ;;  %v1160_v22 = vld [vmem:[#allocation9 + $0x8] sm:$0xff] }
  0x41   : > { %v1150_v19 = vld [vmem:[%s1701_s10 + $0x38] sm:$0xff]  ;;  %v1161_v21 = vld [vmem:[#allocation9 + $0x10] sm:$0xff]  ;;  %v1159_v23 = vld [vmem:[#allocation9] sm:$0xff]  ;;  %p1455_p4 = pnand %p1454_p1, %p1659_p7 }
  0x42   : > { %751 = vmatpush.bf16.msra.mxu1 %v1165_v13  ;;  %1216 = vmatpush.bf16.msra.mxu3 %v1165_v13  ;;  %v1162_v20 = vld [vmem:[#allocation9 + $0x18] sm:$0xff]  ;;  %v1315_v25 = vld [vmem:[%s1816_s3] ss:$0 sm:$0xff] }
  0x43   : > { %540 = vmatpush.bf16.msra.mxu0 %v1156_v2  ;;  %1209 = vmatpush.bf16.msra.mxu2 %v1156_v2  ;;  %p1456_p8 = pneg %p1455_p4 }
  0x46   : > { %752 = vmatpush.bf16.msra.mxu1 %v1164_v14  ;;  %1217 = vmatpush.bf16.msra.mxu3 %v1164_v14 }
  0x47   : > { %541 = vmatpush.bf16.msra.mxu0 %v1155_v3  ;;  %1210 = vmatpush.bf16.msra.mxu2 %v1155_v3 }
  0x4a   : > { %753 = vmatpush.bf16.msra.mxu1 %v1163_v15  ;;  %1218 = vmatpush.bf16.msra.mxu3 %v1163_v15 }
  0x4b   : > { %542 = vmatpush.bf16.msra.mxu0 %v1154_v4  ;;  %1211 = vmatpush.bf16.msra.mxu2 %v1154_v4 }
  0x4e   : > { %754 = vmatpush.bf16.msra.mxu1 %v1162_v20  ;;  %1219 = vmatpush.bf16.msra.mxu3 %v1162_v20 }
  0x4f   : > { %543 = vmatpush.bf16.msra.mxu0 %v1153_v5  ;;  %1212 = vmatpush.bf16.msra.mxu2 %v1153_v5 }
  0x52   : > { %755 = vmatpush.bf16.msra.mxu1 %v1161_v21  ;;  %1220 = vmatpush.bf16.msra.mxu3 %v1161_v21 }
  0x53   : > { %544 = vmatpush.bf16.msra.mxu0 %v1152_v6  ;;  %1213 = vmatpush.bf16.msra.mxu2 %v1152_v6 }
  0x56   : > { %756 = vmatpush.bf16.msra.mxu1 %v1160_v22  ;;  %1221 = vmatpush.bf16.msra.mxu3 %v1160_v22 }
  0x57   : > { %545 = vmatpush.bf16.msra.mxu0 %v1151_v7  ;;  %1214 = vmatpush.bf16.msra.mxu2 %v1151_v7 }
  0x5a   : > { %546 = vmatmul.bf16.vlgmr.msra.gmra.mxu0 %v1143_v8  ;;  %566 = vmatmul.bf16.vlgmr.msra.gmra.mxu2 %v1147_v9 }
  0x5b   : > { %757 = vmatpush.bf16.msra.mxu1 %v1159_v23  ;;  %1222 = vmatpush.bf16.msra.mxu3 %v1159_v23 }
  0x6a   : > { %551 = vmatmul.bf16.gmra.mxu0 %v1144_v10  ;;  %571 = vmatmul.bf16.gmra.mxu2 %v1148_v11 }
  0x7a   : > { %556 = vmatmul.bf16.gmra.mxu0 %v1145_v16  ;;  %576 = vmatmul.bf16.gmra.mxu2 %v1149_v17  ;;  %v1729_v17 = vld [vmem:[%s1818_s5] ss:$0 sm:$0xff] }
  0x8a   : > { %561 = vmatmul.bf16.gmra.mxu0 %v1146_v18  ;;  %581 = vmatmul.bf16.gmra.mxu2 %v1150_v19  ;;  %v1169_v18 = vld [vmem:[%s1694_s2] sm:$0xff]  }
  0x8b   : > { %v1170_v21 = vunpack.c.l.bf16 %v1169_v18 }
  0xd7   : > { %v547_v24 = vpop.f32.mrf.mxu0 }
  0xd8   : > { %v642_v26 = vadd.f32 %v1315_v25, %v547_v24 }
  0xda   : > { %v658_v29 = vmax.f32 %v642_v26, 0.0  ;;  %v1171_v26 = vunpack.c.h.bf16 %v1169_v18 }
  0xdd   : > { %v567_v27 = vpop.f32.mrf.mxu2 }
  0xde   : > { %v650_v32 = vadd.f32 %v1315_v25, %v567_v27  ;;  %v1203_v27 = vld [vmem:[%s1694_s2 + $0x20] sm:$0xff]  }
  0xdf   : > { %v549_v28 = vpop.f32.mrf.mxu0 }
  0xe0   : > { %v643_v30 = vadd.f32 %v1315_v25, %v549_v28  ;;  %v666_v37 = vmax.f32 %v650_v32, 0.0  ;;  %v1186_v32 = vunpack.c.l.bf16 %v1203_v27 }
  0xe2   : > { %v659_v31 = vmax.f32 %v643_v30, 0.0 }
  0xe4   : > { %v674_v33 = vpack.c.bf16 %v659_v31, %v658_v29 }
  0xe5   : > { %v569_v34 = vpop.f32.mrf.mxu2 }
  0xe6   : > { %v651_v35 = vadd.f32 %v1315_v25, %v569_v34  ;;  %758 = vmatmul.bf16.vlgmr.msra.gmra.mxu1 %v674_v33  ;;  %v1200_v33 = vld [vmem:[%s1694_s2 + $0x8] sm:$0xff]  }
  0xe7   : > { %v552_v36 = vpop.f32.mrf.mxu0 }
  0xe8   : > { %v667_v38 = vmax.f32 %v651_v35, 0.0  ;;  %v644_v40 = vadd.f32 %v1315_v25, %v552_v36 }
  0xea   : > { %v678_v39 = vpack.c.bf16 %v667_v38, %v666_v37  ;;  %v660_v43 = vmax.f32 %v644_v40, 0.0  ;;  %v1174_v38 = vunpack.c.l.bf16 %v1200_v33 }
  0xec   : > { %778 = vmatmul.bf16.vlgmr.msra.gmra.mxu3 %v678_v39 }
  0xed   : > { %v572_v41 = vpop.f32.mrf.mxu2 }
  0xee   : > { %v652_v46 = vadd.f32 %v1315_v25, %v572_v41 }
  0xef   : > { %v554_v42 = vpop.f32.mrf.mxu0 }
  0xf0   : > { %v645_v44 = vadd.f32 %v1315_v25, %v554_v42  ;;  %v668_v51 = vmax.f32 %v652_v46, 0.0 }
  0xf2   : > { %v661_v45 = vmax.f32 %v645_v44, 0.0 }
  0xf4   : > { %v675_v47 = vpack.c.bf16 %v661_v45, %v660_v43  ;;  %v1187_v43 = vunpack.c.h.bf16 %v1203_v27 }
  0xf5   : > { %v574_v48 = vpop.f32.mrf.mxu2 }
  0xf6   : > { %v653_v49 = vadd.f32 %v1315_v25, %v574_v48  ;;  %763 = vmatmul.bf16.gmra.mxu1 %v675_v47  ;;  %v1175_v48 = vunpack.c.h.bf16 %v1200_v33 }
  0xf7   : > { %v557_v50 = vpop.f32.mrf.mxu0 }
  0xf8   : > { %v669_v52 = vmax.f32 %v653_v49, 0.0  ;;  %v646_v54 = vadd.f32 %v1315_v25, %v557_v50  ;;  %v1204_v49 = vld [vmem:[%s1694_s2 + $0x28] sm:$0xff]  }
  0xfa   : > { %v679_v53 = vpack.c.bf16 %v669_v52, %v668_v51  ;;  %v662_v57 = vmax.f32 %v646_v54, 0.0  ;;  %v1190_v54 = vunpack.c.l.bf16 %v1204_v49 }
  0xfc   : > { %783 = vmatmul.bf16.gmra.mxu3 %v679_v53 }
  0xfd   : > { %v577_v55 = vpop.f32.mrf.mxu2 }
  0xfe   : > { %v654_v60 = vadd.f32 %v1315_v25, %v577_v55  ;;  %v1201_v55 = vld [vmem:[%s1694_s2 + $0x10] sm:$0xff]  }
  0xff   : > { %v559_v56 = vpop.f32.mrf.mxu0 }
 0x100   : > { %v647_v58 = vadd.f32 %v1315_v25, %v559_v56  ;;  %v670_v1 = vmax.f32 %v654_v60, 0.0  ;;  %v1178_v60 = vunpack.c.l.bf16 %v1201_v55 }
 0x102   : > { %v663_v59 = vmax.f32 %v647_v58, 0.0 }
 0x104   : > { %v676_v61 = vpack.c.bf16 %v663_v59, %v662_v57 }
 0x105   : > { %v579_v62 = vpop.f32.mrf.mxu2 }
 0x106   : > { %v655_v63 = vadd.f32 %v1315_v25, %v579_v62  ;;  %768 = vmatmul.bf16.gmra.mxu1 %v676_v61 }
 0x107   : > { %v562_v0 = vpop.f32.mrf.mxu0 }
 0x108   : > { %v671_v2 = vmax.f32 %v655_v63, 0.0  ;;  %v648_v4 = vadd.f32 %v1315_v25, %v562_v0 }
 0x10a   : > { %v680_v3 = vpack.c.bf16 %v671_v2, %v670_v1  ;;  %v664_v7 = vmax.f32 %v648_v4, 0.0  ;;  %v1191_v1 = vunpack.c.h.bf16 %v1204_v49 }
 0x10c   : > { %788 = vmatmul.bf16.gmra.mxu3 %v680_v3 }
 0x10d   : > { %v582_v5 = vpop.f32.mrf.mxu2 }
 0x10e   : > { %v656_v10 = vadd.f32 %v1315_v25, %v582_v5 }
 0x10f   : > { %v564_v6 = vpop.f32.mrf.mxu0 }
 0x110   : > { %v649_v8 = vadd.f32 %v1315_v25, %v564_v6  ;;  %v672_v14 = vmax.f32 %v656_v10, 0.0  ;;  %v1179_v6 = vunpack.c.h.bf16 %v1201_v55 }
 0x112   : > { %v665_v9 = vmax.f32 %v649_v8, 0.0 }
 0x114   : > { %v677_v11 = vpack.c.bf16 %v665_v9, %v664_v7  ;;  %v1205_v7 = vld [vmem:[%s1694_s2 + $0x30] sm:$0xff]  }
 0x115   : > { %v584_v12 = vpop.f32.mrf.mxu2 }
 0x116   : > { %v657_v13 = vadd.f32 %v1315_v25, %v584_v12  ;;  %773 = vmatmul.bf16.gmra.mxu1 %v677_v11  ;;  %v1194_v12 = vunpack.c.l.bf16 %v1205_v7 }
 0x118   : > { %v673_v15 = vmax.f32 %v657_v13, 0.0  ;;  %v1202_v13 = vld [vmem:[%s1694_s2 + $0x18] sm:$0xff]  }
 0x11a   : > { %v681_v16 = vpack.c.bf16 %v673_v15, %v672_v14 }
 0x11c   : > { %793 = vmatmul.bf16.gmra.mxu3 %v681_v16 }
 0x163   : > { %v759_v19 = vpop.f32.mrf.mxu1 }
 0x164   : > { %v760_v20 = vadd.f32 %v1729_v17, %v759_v19  ;;  %v1182_v19 = vunpack.c.l.bf16 %v1202_v13 }
 0x166   : > { %v799_v22 = vmax.f32 %v760_v20, 0.0 }
 0x168   : > { %v847_v23 = vadd.f32 %v1170_v21, %v799_v22 }
 0x16a   : > { %863 = vst [vmem:[%s1734_s12] sm:$0xff] %v847_v23 }
 0x16b   : > { %v761_v24 = vpop.f32.mrf.mxu1 }
 0x16c   : > { %v762_v25 = vadd.f32 %v1729_v17, %v761_v24  ;;  %v1195_v24 = vunpack.c.h.bf16 %v1205_v7 }
 0x16e   : > { %v800_v28 = vmax.f32 %v762_v25, 0.0 }
 0x16f   : > { %v779_v29 = vpop.f32.mrf.mxu3 }
 0x170   : > { %v848_v30 = vadd.f32 %v1171_v26, %v800_v28  ;;  %v780_v31 = vadd.f32 %v1729_v17, %v779_v29  ;;  %v1183_v29 = vunpack.c.h.bf16 %v1202_v13 }
 0x172   : > { %864 = vst [vmem:[%s1734_s12 + $0x8] sm:$0xff] %v848_v30  ;;  %v807_v34 = vmax.f32 %v780_v31, 0.0  ;;  %v1206_v30 = vld [vmem:[%s1694_s2 + $0x38] sm:$0xff]   ;;  %s1457_s2 = scalar_lea.hbm %s1819_s6, 256 }
 0x173   : > { %v764_v35 = vpop.f32.mrf.mxu1  ;;  %p1459_p12 = scmp.lt.s32.totalorder %s1457_s2, %s1453_s18 }
 0x174   : > { %v855_v36 = vadd.f32 %v1186_v32, %v807_v34  ;;  %v765_v37 = vadd.f32 %v1729_v17, %v764_v35  ;;  %v1198_v35 = vunpack.c.l.bf16 %v1206_v30 }
 0x175   : > { %p1460_p13 = por %p1459_p12, %p1458_p10 }
 0x176   : > { %871 = vst [vmem:[%s1734_s12 + $0x40] sm:$0xff] %v855_v36  ;;  %v801_v39 = vmax.f32 %v765_v37, 0.0 }
 0x177   : > { %v781_v40 = vpop.f32.mrf.mxu3  ;;  %p1461_p0 = pnand %p1460_p13, %p1456_p8 }
 0x178   : > { %v849_v41 = vadd.f32 %v1174_v38, %v801_v39  ;;  %v782_v42 = vadd.f32 %v1729_v17, %v781_v40  ;;  %v1199_v40 = vunpack.c.h.bf16 %v1206_v30 }
 0x17a   : > { %865 = vst [vmem:[%s1734_s12 + $0x10] sm:$0xff] %v849_v41  ;;  %v808_v44 = vmax.f32 %v782_v42, 0.0 }
 0x17b   : > { %v766_v45 = vpop.f32.mrf.mxu1 }
 0x17c   : > { %v856_v46 = vadd.f32 %v1187_v43, %v808_v44  ;;  %v767_v47 = vadd.f32 %v1729_v17, %v766_v45 }
 0x17e   : > { %872 = vst [vmem:[%s1734_s12 + $0x48] sm:$0xff] %v856_v46  ;;  %v802_v50 = vmax.f32 %v767_v47, 0.0 }
 0x17f   : > { %v784_v51 = vpop.f32.mrf.mxu3 }
 0x180   : > { %v850_v52 = vadd.f32 %v1175_v48, %v802_v50  ;;  %v785_v53 = vadd.f32 %v1729_v17, %v784_v51 }
 0x182   : > { %866 = vst [vmem:[%s1734_s12 + $0x18] sm:$0xff] %v850_v52  ;;  %v809_v56 = vmax.f32 %v785_v53, 0.0 }
 0x183   : > { %v769_v57 = vpop.f32.mrf.mxu1 }
 0x184   : > { %v857_v58 = vadd.f32 %v1190_v54, %v809_v56  ;;  %v770_v59 = vadd.f32 %v1729_v17, %v769_v57 }
 0x186   : > { %873 = vst [vmem:[%s1734_s12 + $0x50] sm:$0xff] %v857_v58  ;;  %v803_v61 = vmax.f32 %v770_v59, 0.0 }
 0x187   : > { %v786_v62 = vpop.f32.mrf.mxu3 }
 0x188   : > { %v851_v63 = vadd.f32 %v1178_v60, %v803_v61  ;;  %v787_v0 = vadd.f32 %v1729_v17, %v786_v62 }
 0x18a   : > { %867 = vst [vmem:[%s1734_s12 + $0x20] sm:$0xff] %v851_v63  ;;  %v810_v2 = vmax.f32 %v787_v0, 0.0 }
 0x18b   : > { %v771_v3 = vpop.f32.mrf.mxu1 }
 0x18c   : > { %v858_v4 = vadd.f32 %v1191_v1, %v810_v2  ;;  %v772_v5 = vadd.f32 %v1729_v17, %v771_v3 }
 0x18e   : > { %874 = vst [vmem:[%s1734_s12 + $0x58] sm:$0xff] %v858_v4  ;;  %v804_v8 = vmax.f32 %v772_v5, 0.0 }
 0x18f   : > { %v789_v9 = vpop.f32.mrf.mxu3 }
 0x190   : > { %v852_v10 = vadd.f32 %v1179_v6, %v804_v8  ;;  %v790_v11 = vadd.f32 %v1729_v17, %v789_v9 }
 0x192   : > { %868 = vst [vmem:[%s1734_s12 + $0x28] sm:$0xff] %v852_v10  ;;  %v811_v14 = vmax.f32 %v790_v11, 0.0 }
 0x193   : > { %v774_v15 = vpop.f32.mrf.mxu1 }
 0x194   : > { %v859_v16 = vadd.f32 %v1194_v12, %v811_v14  ;;  %v775_v18 = vadd.f32 %v1729_v17, %v774_v15 }
 0x196   : > { %875 = vst [vmem:[%s1734_s12 + $0x60] sm:$0xff] %v859_v16  ;;  %v805_v20 = vmax.f32 %v775_v18, 0.0 }
 0x197   : > { %v791_v21 = vpop.f32.mrf.mxu3 }
 0x198   : > { %v853_v22 = vadd.f32 %v1182_v19, %v805_v20  ;;  %v792_v23 = vadd.f32 %v1729_v17, %v791_v21 }
 0x19a   : > { %869 = vst [vmem:[%s1734_s12 + $0x30] sm:$0xff] %v853_v22  ;;  %v812_v25 = vmax.f32 %v792_v23, 0.0 }
 0x19b   : > { %v776_v26 = vpop.f32.mrf.mxu1 }
 0x19c   : > { %v860_v27 = vadd.f32 %v1195_v24, %v812_v25  ;;  %v777_v28 = vadd.f32 %v1729_v17, %v776_v26 }
 0x19e   : > { %876 = vst [vmem:[%s1734_s12 + $0x68] sm:$0xff] %v860_v27  ;;  %v806_v31 = vmax.f32 %v777_v28, 0.0 }
 0x19f   : > { %v794_v32 = vpop.f32.mrf.mxu3 }
 0x1a0   : > { %v854_v33 = vadd.f32 %v1183_v29, %v806_v31  ;;  %v795_v34 = vadd.f32 %v1729_v17, %v794_v32 }
 0x1a2   : > { %870 = vst [vmem:[%s1734_s12 + $0x38] sm:$0xff] %v854_v33  ;;  %v813_v36 = vmax.f32 %v795_v34, 0.0 }
 0x1a4   : > { %v861_v37 = vadd.f32 %v1198_v35, %v813_v36 }
 0x1a6   : > { %877 = vst [vmem:[%s1734_s12 + $0x70] sm:$0xff] %v861_v37 }
 0x1a7   : > { %v796_v38 = vpop.f32.mrf.mxu3 }
 0x1a8   : > { %v797_v39 = vadd.f32 %v1729_v17, %v796_v38 }
 0x1aa   : > { %v814_v41 = vmax.f32 %v797_v39, 0.0 }
 0x1ac   : > { %v862_v42 = vadd.f32 %v1199_v40, %v814_v41 }
 0x1ae   : > { %878 = vst [vmem:[%s1734_s12 + $0x78] sm:$0xff] %v862_v42 }
 0x1af   : > { %1464 = shalt.err (!%p1461_p0)
}
 0x1b0   : > { %s1537_s4 = smov 128   ;;  %s1538_s10 = smov 8  }
 0x1b1   : > { %1235 = dma.vmem_to_hbm [thread:$0]  (%p1659_p7), %s893_s28, 2048, %s895_s15, %s880_s17, %s1537_s4, %s1537_s4, %s1538_s10  }
 0x1b2 PF: > { %s909_s29 = sand.u32 1, %s1511_s21   ;;  %p1252_p3 = pnand %p1027_p11, %p1619_p6 }
 0x1b3   : > { %s910_s16 = scalar_lea.sflag [#allocation5], %s909_s29 }
 0x1b4   : > { %p1253_p5 = pneg %p1252_p3 }
 0x1b6   : > { %1506 = dma.done.wait (%p1253_p5), %s910_s16, 2048  }
 0x1b7   : > { %1508 = vsyncadd (%p1253_p5), %s910_s16, 4294965248  ;;  %s26_s26 = sadd.s32 1, %s1531_s26   ;;  %s1845_s7 = sld [smem:[#allocation17_spill]] }
 0x1b8   : > { %p23_p9 = scmp.ge.s32.totalorder %s26_s26, 4   ;;  %s1846_s23 = sld [smem:[#allocation21_spill]] }
 0x1b9   : > { %s1847_s24 = sld [smem:[#allocation18_spill]]  ;;  %s1849_s21 = smov %s1515_s22 }
 0x1ba   : > { %s1848_s25 = sld [smem:[#allocation20_spill]]  ;;  %25 = sbr.rel (!%p23_p9) target bundleno = 12 (0xc), region = 119 }
 0x1bd   : > { %s1850_s22 = smov %s1845_s7 }
 0x1bf   :  { %916 = vsyncpa [#allocation4], 1 }
 0x1c0   :  { %918 = vsyncpa [#allocation4 + $0x1], 1 }
 0x1c1   :  { %919 = vsyncpa [#allocation7], 1 }
 0x1c2   :  { %921 = vsyncpa [#allocation7 + $0x1], 1 }
 0x1c3   :  { %922 = vsyncpa [#allocation10], 1 }
 0x1c4   :  { %923 = vsyncpa [#allocation5], 1 }
 0x1c5   :  { %925 = vsyncpa [#allocation5 + $0x1], 1 }

</bundles_post_ra>
